<compile_context>
chip_gen: v7x
topology: tpu7x:2x2x1
jax: 0.10.0
libtpu: 0.0.40
codegen_flags: <defaults>
</compile_context>

<pallas_src>
import jax
import jax.numpy as jnp
from jax.experimental import pallas as pl
from jax.experimental.pallas import tpu as pltpu

LANES = 128
SUBLANES = 8
CHUNK_ROWS = 64                       # 8 vregs per f32 input chunk -> no spills
VMEM_INPUT_BUDGET = 12 * 1024 * 1024  # double-buffered inputs; fits every gen
MAX_TILE_ROWS = 8192


def _round_up(v, m):
    return ((v + m - 1) // m) * m


def _round_down(v, m):
    return (v // m) * m


def _make_kernel(tile_rows, chunk_rows, valid_rows, need_tail_mask):
    """Kernel closure over static tiling parameters."""
    n_chunks = tile_rows // chunk_rows

    def kernel(x_ref, y_ref, m_ref, o_ref):
        block_row0 = pl.program_id(0) * tile_rows

        if need_tail_mask:
            # Local row index within a chunk; compared against the number of
            # valid rows remaining in this block (OOB rows are undefined).
            row_iota = jax.lax.broadcasted_iota(jnp.int32, (chunk_rows, LANES), 0)

        def body(k, acc):
            r0 = pl.multiple_of(k * chunk_rows, chunk_rows)
            x = x_ref[pl.ds(r0, chunk_rows), :].astype(jnp.float32)
            y = y_ref[pl.ds(r0, chunk_rows), :].astype(jnp.float32)
            m = m_ref[pl.ds(r0, chunk_rows), :].astype(jnp.float32)

            # 0.9*l1*m + 0.1*(1-m)*l1  ==  l1 * (0.1 + 0.8*m)   (exact rewrite)
            w = jnp.abs(x - y) * (jnp.float32(0.1) + jnp.float32(0.8) * m)

            if need_tail_mask:
                limit = valid_rows - block_row0 - k * chunk_rows
                w = jnp.where(row_iota < limit, w, jnp.float32(0.0))

            # Reduce the chunk to an (8,128) vreg-shaped partial with pure
            # elementwise (VPU) adds; no cross-lane XLU work, no SMEM.
            part = w.reshape(chunk_rows // SUBLANES, SUBLANES, LANES).sum(axis=0)
            return acc + part

        acc = jax.lax.fori_loop(
            0, n_chunks, body, jnp.zeros((SUBLANES, LANES), jnp.float32)
        )
        o_ref[...] = acc[None]  # (1, 8, 128) per-block partial sum

    return kernel


def weight_l1_loss(x, y, mask):
    """Scalar mean of the weighted L1 loss. x, y, mask must share a shape."""
    assert x.shape == y.shape == mask.shape
    total = x.size

    # Fallback only: Pallas handles narrow int/float dtypes natively; bool
    # refs are the one case we convert (producers should pass int8 instead).
    if mask.dtype == jnp.bool_:
        mask = mask.astype(jnp.int8)

    rows = pl.cdiv(total, LANES)

    # --- Lane-dense slab (metadata-only reshape in the common case). -------
    if total % LANES == 0:
        def slab(a):
            return a.reshape(rows, LANES)
    else:
        # Rare ragged-lane tail: pad flat arrays by < 128 zeros (they
        # contribute exactly 0 to the sum; divisor uses the true count).
        pad = rows * LANES - total

        def slab(a):
            return jnp.pad(a.reshape(-1), (0, pad)).reshape(rows, LANES)

    x2, y2, m2 = slab(x), slab(y), slab(mask)

    # --- Generation-aware tile sizing (double-buffered footprint budget). --
    bytes_per_row = LANES * (x.dtype.itemsize + y.dtype.itemsize + mask.dtype.itemsize)
    tile_rows = min(MAX_TILE_ROWS, VMEM_INPUT_BUDGET // (2 * bytes_per_row))
    tile_rows = min(tile_rows, _round_up(rows, SUBLANES))
    if tile_rows >= CHUNK_ROWS:
        tile_rows = _round_down(tile_rows, CHUNK_ROWS)
        chunk_rows = CHUNK_ROWS
    else:
        tile_rows = max(SUBLANES, _round_up(tile_rows, SUBLANES))
        chunk_rows = SUBLANES

    num_blocks = pl.cdiv(rows, tile_rows)
    need_tail_mask = (rows % tile_rows) != 0  # last block not fully valid

    in_block = pl.BlockSpec((tile_rows, LANES), lambda i: (i, 0))
    kernel = _make_kernel(tile_rows, chunk_rows, rows, need_tail_mask)

    partials = pl.pallas_call(
        kernel,
        out_shape=jax.ShapeDtypeStruct((num_blocks, SUBLANES, LANES), jnp.float32),
        grid_spec=pltpu.PrefetchScalarGridSpec(
            num_scalar_prefetch=0,
            grid=(num_blocks,),
            in_specs=[in_block, in_block, in_block],
            out_specs=pl.BlockSpec((1, SUBLANES, LANES), lambda i: (i, 0, 0)),
        ),
        compiler_params=pltpu.CompilerParams(
            dimension_semantics=("parallel",),
            vmem_limit_bytes=32 * 1024 * 1024,
        ),
    )(x2, y2, m2)

    # Final tiny reduction + mean divisor (true element count) in plain JAX.
    return jnp.sum(partials) / jnp.float32(total)


def weight_l1_loss_ref(x, y, mask):
    l1 = jnp.abs(x.astype(jnp.float32) - y.astype(jnp.float32))
    m = mask.astype(jnp.float32)
    return jnp.mean(0.9 * l1 * m + 0.1 * (1.0 - m) * l1)


if __name__ == "__main__":
    key = jax.random.PRNGKey(0)
    kx, ky, km = jax.random.split(key, 3)

    # NCHW inputs, consistent with a small conv-feature-map regression target.
    shape = (2, 4, 16, 16)
    x = jax.random.normal(kx, shape, dtype=jnp.float32)
    y = jax.random.normal(ky, shape, dtype=jnp.float32)
    mask = (jax.random.uniform(km, shape) > 0.5).astype(jnp.float32)

    out = weight_l1_loss(x, y, mask)
    out = jax.block_until_ready(out)

    ref = weight_l1_loss_ref(x, y, mask)
    assert jnp.allclose(out, ref, rtol=1e-5, atol=1e-6), (out, ref)

    print("KERNEL_OK")
</pallas_src>

<mosaic_0001>
module attributes {stable_mosaic.version = 11 : i64} {
  func.func @kernel(%arg0: i32, %arg1: memref<16x128xf32, #tpu.memory_space<vmem>>, %arg2: memref<16x128xf32, #tpu.memory_space<vmem>>, %arg3: memref<16x128xf32, #tpu.memory_space<vmem>>, %arg4: memref<1x8x128xf32, #tpu.memory_space<vmem>>) attributes {dimension_semantics = [#tpu.dimension_semantics<parallel>], iteration_bounds = array<i64: 1>, scalar_prefetch = 0 : i64, scratch_operands = 0 : i64, tpu.core_type = #tpu.core_type<tc>, window_params = [{transform_indices = @transform_0, window_bounds = array<i64: 16, 128>}, {transform_indices = @transform_1, window_bounds = array<i64: 16, 128>}, {transform_indices = @transform_2, window_bounds = array<i64: 16, 128>}, {transform_indices = @transform_3, window_bounds = array<i64: 1, 8, 128>}]} {
    %cst = arith.constant 0.000000e+00 : f32
    %0 = vector.broadcast %cst : f32 to vector<8x128xf32>
    %c0_i32 = arith.constant 0 : i32
    %c2_i32 = arith.constant 2 : i32
    %1 = arith.addi %c0_i32, %c2_i32 : i32
    %c1_i32 = arith.constant 1 : i32
    %2 = scf.for %arg5 = %c0_i32 to %1 step %c1_i32 iter_args(%arg6 = %0) -> (vector<8x128xf32>)  : i32 {
      %c8_i32 = arith.constant 8 : i32
      %5 = arith.muli %arg5, %c8_i32 : i32
      %6 = tpu.assume_multiple %5, 8 : i32
      %7 = arith.index_cast %6 : i32 to index
      %c0_3 = arith.constant 0 : index
      %8 = vector.load %arg1[%7, %c0_3] : memref<16x128xf32, #tpu.memory_space<vmem>>, vector<8x128xf32>
      %9 = arith.index_cast %6 : i32 to index
      %c0_4 = arith.constant 0 : index
      %10 = vector.load %arg2[%9, %c0_4] : memref<16x128xf32, #tpu.memory_space<vmem>>, vector<8x128xf32>
      %11 = arith.index_cast %6 : i32 to index
      %c0_5 = arith.constant 0 : index
      %12 = vector.load %arg3[%11, %c0_5] : memref<16x128xf32, #tpu.memory_space<vmem>>, vector<8x128xf32>
      %13 = arith.subf %8, %10 : vector<8x128xf32>
      %14 = math.absf %13 : vector<8x128xf32>
      %cst_6 = arith.constant 8.000000e-01 : f32
      %15 = vector.broadcast %cst_6 : f32 to vector<8x128xf32>
      %16 = arith.mulf %15, %12 : vector<8x128xf32>
      %cst_7 = arith.constant 1.000000e-01 : f32
      %17 = vector.broadcast %cst_7 : f32 to vector<8x128xf32>
      %18 = arith.addf %17, %16 : vector<8x128xf32>
      %19 = arith.mulf %14, %18 : vector<8x128xf32>
      %20 = vector.shape_cast %19 : vector<8x128xf32> to vector<1x8x128xf32>
      %cst_8 = arith.constant dense<0.000000e+00> : vector<8x128xf32>
      %21 = vector.multi_reduction <add>, %20, %cst_8 [0] : vector<1x8x128xf32> to vector<8x128xf32>
      %22 = arith.addf %arg6, %21 : vector<8x128xf32>
      scf.yield %22 : vector<8x128xf32>
    }
    %c2_i32_0 = arith.constant 2 : i32
    %3 = vector.shape_cast %2 : vector<8x128xf32> to vector<1x8x128xf32>
    %c0 = arith.constant 0 : index
    %c0_1 = arith.constant 0 : index
    %c0_2 = arith.constant 0 : index
    %4 = vector.load %arg4[%c0, %c0_1, %c0_2] : memref<1x8x128xf32, #tpu.memory_space<vmem>>, vector<1x8x128xf32>
    tpu.vector_store %arg4[%c0, %c0_1, %c0_2], %3 {strides = array<i32>} : memref<1x8x128xf32, #tpu.memory_space<vmem>>, vector<1x8x128xf32>,
    return
  }
  func.func @transform_0(%arg0: i32) -> (i32, i32) {
    %c0_i32 = arith.constant 0 : i32
    %c0_i32_0 = arith.constant 0 : i32
    return %arg0, %c0_i32 : i32, i32
  }
  func.func @transform_1(%arg0: i32) -> (i32, i32) {
    %c0_i32 = arith.constant 0 : i32
    %c0_i32_0 = arith.constant 0 : i32
    return %arg0, %c0_i32 : i32, i32
  }
  func.func @transform_2(%arg0: i32) -> (i32, i32) {
    %c0_i32 = arith.constant 0 : i32
    %c0_i32_0 = arith.constant 0 : i32
    return %arg0, %c0_i32 : i32, i32
  }
  func.func @transform_3(%arg0: i32) -> (i32, i32, i32) {
    %c0_i32 = arith.constant 0 : i32
    %c0_i32_0 = arith.constant 0 : i32
    %c0_i32_1 = arith.constant 0 : i32
    return %arg0, %c0_i32, %c0_i32_0 : i32, i32, i32
  }
}

</mosaic_0001>

<bundles_post_ra>
// kernel: tpu_custom_call.1
= control target key start
LH: loop header
LB: loop body
LE: loop exit
PB: predicated region body
PF: predicated region fallthrough
CT: control target
= control target key end

     0   :  { %8 = vsyncpa [#allocation3], 0  ;;  %s331_s0 = inlined_call_operand.hbm [shape: f32[16,128], index: 0, kind: input, shape index: {}]   ;;  %s332_s1 = inlined_call_operand.hbm [shape: f32[16,128], index: 1, kind: input, shape index: {}]   ;;  %s333_s2 = inlined_call_operand.hbm [shape: f32[16,128], index: 2, kind: input, shape index: {}]   ;;  %s334_s3 = inlined_call_operand.hbm [shape: f32[1,8,128], index: 3, kind: output, shape index: {}]  }
   0x1   :  { %9 = vsyncpa [#allocation6], 0 }
   0x2   :  { %10 = vsyncpa [#allocation4], 0  ;;  %s241_s12 = smov [#allocation5]   ;;  %s242_s14 = smov [#allocation2]  }
   0x3   :  { %s28_s13 = sshll.u32 %s241_s12, 4  ;;  %s16_s15 = sshll.u32 %s242_s14, 4  ;;  %s29_s13 = int_to_ptr.vmem [resolvable:$true] %s28_s13  ;;  %s267_s15 = int_to_ptr.vmem [resolvable:$true] %s16_s15 }
   0x4   :  { %s131_s18 = scalar_lea.hbm %s332_s1, 256 }
   0x5   :  { %p132_p0 = scmp.ne.s32.totalorder %s332_s1, %s131_s18  ;;  %p135_p1 = scmp.lt.u32.totalorder %s131_s18, %s332_s1 }
   0x7   :  { %p137_p2 = pnand %p135_p1, %p132_p0 }
   0x9   :  { %140 = shalt.err (!%p137_p2)
}
   0xa   :  { %s141_s23 = scalar_lea.vmem %s29_s13, 256  ;;  %p146_p4 = scmp.lt.s32.totalorder %s29_s13, %s29_s13 }
   0xb   :  { %p142_p3 = scmp.ne.s32.totalorder %s29_s13, %s141_s23  ;;  %p147_p5 = scmp.lt.s32.totalorder %s141_s23, %s141_s23 }
   0xd   :  { %p148_p6 = por %p147_p5, %p146_p4 }
   0xf   :  { %p149_p7 = pnand %p148_p6, %p142_p3 }
  0x11   :  { %152 = shalt.err (!%p149_p7)
}
  0x12   :  { %s243_s24 = smov 128   ;;  %s244_s25 = smov 8  }
  0x13   :  { %34 = dma.hbm_to_vmem [thread:$0]  %s332_s1, 256, %s29_s13, [#allocation6], %s243_s24, %s243_s24, %s244_s25  }
  0x14   :  { %s153_s30 = scalar_lea.hbm %s331_s0, 256 }
  0x15   :  { %p154_p8 = scmp.ne.s32.totalorder %s331_s0, %s153_s30  ;;  %p157_p9 = scmp.lt.u32.totalorder %s153_s30, %s331_s0 }
  0x17   :  { %p159_p10 = pnand %p157_p9, %p154_p8 }
  0x19   :  { %162 = shalt.err (!%p159_p10)
}
  0x1a   :  { %s163_s8 = scalar_lea.vmem %s267_s15, 256  ;;  %p168_p12 = scmp.lt.s32.totalorder %s267_s15, %s267_s15 }
  0x1b   :  { %p164_p11 = scmp.ne.s32.totalorder %s267_s15, %s163_s8  ;;  %p169_p13 = scmp.lt.s32.totalorder %s163_s8, %s163_s8 }
  0x1d   :  { %p170_p0 = por %p169_p13, %p168_p12 }
  0x1f   :  { %p171_p1 = pnand %p170_p0, %p164_p11 }
  0x21   :  { %174 = shalt.err (!%p171_p1)
}
  0x22   :  { %22 = dma.hbm_to_vmem [thread:$0]  %s331_s0, 256, %s267_s15, [#allocation3], %s243_s24, %s243_s24, %s244_s25  }
  0x23   :  { %s245_s10 = smov [#allocation7]   ;;  %s175_s14 = scalar_lea.hbm %s333_s2, 256 }
  0x24   :  { %s40_s11 = sshll.u32 %s245_s10, 4  ;;  %p176_p2 = scmp.ne.s32.totalorder %s333_s2, %s175_s14  ;;  %s41_s11 = int_to_ptr.vmem [resolvable:$true] %s40_s11 }
  0x25   :  { %p179_p3 = scmp.lt.u32.totalorder %s175_s14, %s333_s2 }
  0x27   :  { %p181_p4 = pnand %p179_p3, %p176_p2 }
  0x29   :  { %184 = shalt.err (!%p181_p4)
}
  0x2a   :  { %s185_s20 = scalar_lea.vmem %s41_s11, 256  ;;  %p190_p6 = scmp.lt.s32.totalorder %s41_s11, %s41_s11 }
  0x2b   :  { %p186_p5 = scmp.ne.s32.totalorder %s41_s11, %s185_s20  ;;  %p191_p7 = scmp.lt.s32.totalorder %s185_s20, %s185_s20 }
  0x2d   :  { %p192_p8 = por %p191_p7, %p190_p6 }
  0x2f   :  { %p193_p9 = pnand %p192_p8, %p186_p5 }
  0x31   :  { %196 = shalt.err (!%p193_p9)
}
  0x32   :  { %46 = dma.hbm_to_vmem [thread:$0]  %s333_s2, 256, %s41_s11, [#allocation6], %s243_s24, %s243_s24, %s244_s25  }
  0x33   :  { %227 = dma.done.wait [#allocation3], 256  }
  0x34   :  { %228 = vsyncadd [#allocation3], 4294967040 }
  0x35   :  { %229 = dma.done.wait [#allocation6], 512  }
  0x36   :  { %230 = vsyncadd [#allocation6], 4294966784  ;;  %v233_v0 = vmov 0.0   ;;  %s237_s21 = smov 0  }
  0x37 LB: > { %s108_s22 = sshll.u32 %s239_s21, 3  ;;  %s61_s21 = sadd.s32 1, %s239_s21   ;;  %s239_s21 = sphi %s237_s21, %s61_s21   ;;  %v235_v0 = vphi %v233_v0, %v234_v0  }
  0x38   : > { %s64_s23 = scalar_lea.vmem [#allocation2], %s108_s22  ;;  %s66_s26 = scalar_lea.vmem [#allocation5], %s108_s22 }
  0x39   : > { %v65_v1 = vld [vmem:[%s64_s23] sm:$0xff]  ;;  %s68_s27 = scalar_lea.vmem [#allocation7], %s108_s22  ;;  %p58_p10 = scmp.ge.s32.totalorder %s61_s21, 2  }
  0x3a   : > { %v67_v2 = vld [vmem:[%s66_s26] sm:$0xff]  ;;  %s246_s2 = smov (%p58_p10), [#allocation8]  }
  0x3b   : > { %v69_v3 = vld [vmem:[%s68_s27] sm:$0xff]  ;;  %v70_v4 = vsub.f32 %v65_v1, %v67_v2  ;;  %s84_s24 = sshll.u32 (%p58_p10), %s246_s2, 4  ;;  %s85_s24 = int_to_ptr.vmem [resolvable:$true] %s84_s24 }
  0x3c   : > { %v72_v5 = vmul.f32 0.8, %v69_v3  ;;  %s197_s25 = scalar_lea.vmem (%p58_p10), %s85_s24, 128  ;;  %p202_p12 = scmp.lt.s32.totalorder (%p58_p10), %s85_s24, %s85_s24 }
  0x3d   : > { %v71_v6 = vand.u32 2147483647, %v70_v4  ;;  %p198_p11 = scmp.ne.s32.totalorder (%p58_p10), %s85_s24, %s197_s25  ;;  %p203_p13 = scmp.lt.s32.totalorder (%p58_p10), %s197_s25, %s197_s25 }
  0x3e   : > { %v73_v7 = vadd.f32 0.1, %v72_v5  ;;  %60 = sbr.rel (!%p58_p10) target bundleno = 55 (0x37), region = 54 }
  0x3f   :  { %p204_p0 = por (%p58_p10), %p203_p13, %p202_p12 }
  0x40   : > { %v74_v8 = vmul.f32 %v73_v7, %v71_v6 }
  0x41   :  { %p205_p1 = pnand (%p58_p10), %p204_p0, %p198_p11 }
  0x42   : > { %v76_v9 = vadd.f32 %v235_v0, %v74_v8  }
  0x44   : > { %v234_v0 = vmov %v76_v9   ;;  %77 = vst [vmem:[#allocation8] sm:$0xff] (%p58_p10), %v76_v9 }
  0x45   :  { %208 = shalt.err (!%p205_p1)
}
  0x46   :  { %s209_s30 = scalar_lea.hbm %s334_s3, 128 }
  0x47   :  { %p210_p2 = scmp.ne.s32.totalorder %s334_s3, %s209_s30  ;;  %p213_p3 = scmp.lt.u32.totalorder %s209_s30, %s334_s3 }
  0x49   :  { %p215_p4 = pnand %p213_p3, %p210_p2 }
  0x4b   :  { %218 = shalt.err (!%p215_p4)
}
  0x4c   :  { %87 = dma.vmem_to_hbm [thread:$0]  %s85_s24, 128, %s334_s3, [#allocation4]  }
  0x4d   :  { %231 = dma.done.wait [#allocation4], 128  }
  0x4e   :  { %232 = vsyncadd [#allocation4], 4294967168 }
  0x4f   :  { %91 = vsyncpa [#allocation3], 1 }
  0x50   :  { %92 = vsyncpa [#allocation6], 1 }
  0x51   :  { %93 = vsyncpa [#allocation4], 1 }

</bundles_post_ra>
